<compile_context>
chip_gen: v5e
topology: v5e:2x2
jax: 0.10.0
libtpu: 0.0.40
codegen_flags: <defaults>
</compile_context>

<pallas_src>
import functools

import jax
import jax.numpy as jnp
from jax.experimental import pallas as pl
from jax.experimental.pallas import tpu as pltpu


def _mlp_kernel(x_ref, w1_ref, b1_ref, w2_ref, b2_ref, o_ref):
    # fc1 on the MXU: bf16 operands, f32 accumulation.
    x_bf16 = x_ref[...].astype(jnp.bfloat16)  # no-op when x is streamed as bf16
    h = jnp.dot(x_bf16, w1_ref[...], preferred_element_type=jnp.float32)
    h = h + b1_ref[...]                       # f32 bias add
    # tanh-approx GELU: transcendental routed to the EUP (separate VLIW slot)
    # instead of an f32 erf polynomial saturating the VALU. ~1e-3 deviation from
    # torch.nn.GELU()'s exact erf default (deliberate inference-time choice).
    h = jax.nn.gelu(h, approximate=True)
    # dropout p=0.0 -> identity (eval semantics)
    # fc2 on the MXU: bf16 intermediate (native MXU dtype, halves spill traffic).
    p = h.astype(jnp.bfloat16)
    o = jnp.dot(p, w2_ref[...], preferred_element_type=jnp.float32)
    o = o + b2_ref[...]
    o_ref[...] = o.astype(o_ref.dtype)


def prepare_mlp_params(w1, b1, w2, b2):
    """One-time weight conversion (call at model-load time, NOT per forward).

    w1: (D_in, H), b1: (H,), w2: (H, D_out), b2: (D_out,) in f32 (torch layout
    transposed). Returns bf16 weights + f32 row-vector biases for mlp_forward."""
    return (
        jnp.asarray(w1, dtype=jnp.bfloat16),
        jnp.asarray(b1, dtype=jnp.float32).reshape(1, -1),
        jnp.asarray(w2, dtype=jnp.bfloat16),
        jnp.asarray(b2, dtype=jnp.float32).reshape(1, -1),
    )


def _round_up(v, m):
    return ((v + m - 1) // m) * m


def _pick_tm(M, tm):
    """Row tile: big (MXU-friendly), multiple of 8, and >=2 tiles for dual-TC v7x."""
    tm = min(tm, _round_up(M, 8))           # never allocate tiles larger than (padded) M
    if M > 8 and pl.cdiv(M, tm) < 2:
        tm = max(8, _round_up(pl.cdiv(M, 2), 8))   # give each TensorCore a tile
    return tm


def _vmem_limit_bytes(tm, d_in, hidden, d_out, x_itemsize, out_itemsize):
    """Generation-aware VMEM budget: real footprint + headroom, capped at 7/8 of VMEM."""
    resident = (d_in * hidden + hidden * d_out) * 2 + (hidden + d_out) * 4  # bf16 W + f32 b
    x_bufs = 2 * tm * d_in * x_itemsize        # double-buffered input tiles
    o_bufs = 2 * tm * d_out * out_itemsize     # double-buffered output tiles
    interm = tm * hidden * (4 + 2)             # f32 h + bf16 copy of h
    need = (resident + x_bufs + o_bufs + interm) * 3 // 2 + (4 << 20)  # compiler scratch headroom
    try:
        cap = int(getattr(pltpu.get_tpu_info(), "vmem_capacity_bytes", 128 << 20))
    except Exception:  # pragma: no cover - conservative fallback (v7x-sized)
        cap = 64 << 20
    return max(32 << 20, min(int(need), cap * 7 // 8))


@functools.partial(jax.jit, static_argnames=("tm",))
def mlp_forward(x, w1_bf, b1, w2_bf, b2, *, tm=512):
    """x: (B, N, D_in); w1_bf: (D_in, H) bf16; b1: (1, H) f32; w2_bf: (H, D_out) bf16;
    b2: (1, D_out) f32 — as produced by prepare_mlp_params().

    Returns (B, N, D_out) in x.dtype. Feed bf16 activations to halve streaming."""
    B, N, D_in = x.shape
    H = w1_bf.shape[1]
    D_out = w2_bf.shape[1]
    M = B * N

    # No wrapper-side padding: the grid handles the ragged last row tile.
    x2 = x.reshape(M, D_in)
    tm = _pick_tm(M, tm)
    n_tiles = pl.cdiv(M, tm)

    out_dtype = x.dtype
    limit = _vmem_limit_bytes(
        tm, D_in, H, D_out,
        jnp.dtype(x.dtype).itemsize, jnp.dtype(out_dtype).itemsize)

    # Weights/biases: whole-array VMEM residents (single copy, no double-buffering).
    resident = pl.BlockSpec(memory_space=pltpu.MemorySpace.VMEM)

    out2 = pl.pallas_call(
        _mlp_kernel,
        out_shape=jax.ShapeDtypeStruct((M, D_out), out_dtype),
        grid_spec=pltpu.PrefetchScalarGridSpec(
            num_scalar_prefetch=0,
            grid=(n_tiles,),
            in_specs=[
                pl.BlockSpec((tm, D_in), lambda i: (i, 0)),  # x row tile (pipelined)
                resident,                                    # W1 (full, single copy)
                resident,                                    # b1
                resident,                                    # W2
                resident,                                    # b2
            ],
            out_specs=pl.BlockSpec((tm, D_out), lambda i: (i, 0)),
        ),
        compiler_params=pltpu.CompilerParams(
            dimension_semantics=("parallel",),   # row tiles shard across TCs (v7x)
            vmem_limit_bytes=limit,
        ),
    )(x2, w1_bf, b1, w2_bf, b2)

    return out2.reshape(B, N, D_out)


def _reference_mlp(x, w1, b1, w2, b2):
    h = jnp.einsum("bnd,dh->bnh", x, w1) + b1
    h = jax.nn.gelu(h, approximate=False)   # torch.nn.GELU() default (exact erf)
    return jnp.einsum("bnh,ho->bno", h, w2) + b2


def _make_params(key, d_in, d_hidden, d_out):
    k1, k2, k3, k4 = jax.random.split(key, 4)
    w1 = jax.random.normal(k1, (d_in, d_hidden), dtype=jnp.float32) * 0.02
    b1 = jax.random.normal(k2, (d_hidden,), dtype=jnp.float32) * 0.01
    w2 = jax.random.normal(k3, (d_hidden, d_out), dtype=jnp.float32) * 0.02
    b2 = jax.random.normal(k4, (d_out,), dtype=jnp.float32) * 0.01
    return w1, b1, w2, b2


if __name__ == "__main__":
    key = jax.random.PRNGKey(0)
    kx1, kp1, kx2, kp2 = jax.random.split(key, 4)

    # Small shapes consistent with the module: batch=2, seq=8, in=32, hidden=64.
    B, N = 2, 8
    in_features, hidden_features = 32, 64
    out_features = in_features  # default: out_features = in_features

    x = jax.random.normal(kx1, (B, N, in_features), dtype=jnp.float32)
    w1, b1, w2, b2 = _make_params(kp1, in_features, hidden_features, out_features)
    params = prepare_mlp_params(w1, b1, w2, b2)   # one-time bf16 conversion

    y = mlp_forward(x, *params)
    jax.block_until_ready(y)
    y_ref = _reference_mlp(x, w1, b1, w2, b2)
    assert y.shape == (B, N, out_features)
    # bf16 MXU operands + tanh GELU -> slightly looser tolerance than pure-f32/erf.
    assert jnp.allclose(y, y_ref, atol=2e-2, rtol=2e-2), float(
        jnp.max(jnp.abs(y - y_ref)))

    # Non-tile-aligned token count (ViT-style N=197): exercises the ragged last
    # row tile (masked store) with no wrapper-side pad/slice, multi-step grid.
    B2, N2, D2, H2 = 2, 197, 64, 256
    x2 = jax.random.normal(kx2, (B2, N2, D2), dtype=jnp.float32)
    raw2 = _make_params(kp2, D2, H2, D2)
    p2 = prepare_mlp_params(*raw2)
    y2 = mlp_forward(x2, *p2)
    jax.block_until_ready(y2)
    y2_ref = _reference_mlp(x2, *raw2)
    assert y2.shape == (B2, N2, D2)
    assert jnp.allclose(y2, y2_ref, atol=2e-2, rtol=2e-2), float(
        jnp.max(jnp.abs(y2 - y2_ref)))

    # bf16 activation streaming path (what the surrounding bf16 network should
    # feed): halves x/out DMA and tile VMEM; output dtype follows input dtype.
    y3 = mlp_forward(x2.astype(jnp.bfloat16), *p2)
    jax.block_until_ready(y3)
    assert y3.dtype == jnp.bfloat16
    assert jnp.allclose(y3.astype(jnp.float32), y2_ref, atol=5e-2, rtol=5e-2), float(
        jnp.max(jnp.abs(y3.astype(jnp.float32) - y2_ref)))

    print("KERNEL_OK")
</pallas_src>

<mosaic_0001>
module attributes {stable_mosaic.version = 11 : i64} {
  func.func @_mlp_kernel(%arg0: i32, %arg1: memref<8x32xf32, #tpu.memory_space<vmem>>, %arg2: memref<32x64xbf16, #tpu.memory_space<vmem>>, %arg3: memref<1x64xf32, #tpu.memory_space<vmem>>, %arg4: memref<64x32xbf16, #tpu.memory_space<vmem>>, %arg5: memref<1x32xf32, #tpu.memory_space<vmem>>, %arg6: memref<8x32xf32, #tpu.memory_space<vmem>>) attributes {dimension_semantics = [#tpu.dimension_semantics<parallel>], iteration_bounds = array<i64: 2>, scalar_prefetch = 0 : i64, scratch_operands = 0 : i64, tpu.core_type = #tpu.core_type<tc>, window_params = [{transform_indices = @transform_0, window_bounds = array<i64: 8, 32>}, {pipeline_mode = #tpu.pipeline_mode<synchronous>, transform_indices = @transform_1, window_bounds = array<i64: 32, 64>}, {pipeline_mode = #tpu.pipeline_mode<synchronous>, transform_indices = @transform_2, window_bounds = array<i64: 1, 64>}, {pipeline_mode = #tpu.pipeline_mode<synchronous>, transform_indices = @transform_3, window_bounds = array<i64: 64, 32>}, {pipeline_mode = #tpu.pipeline_mode<synchronous>, transform_indices = @transform_4, window_bounds = array<i64: 1, 32>}, {transform_indices = @transform_5, window_bounds = array<i64: 8, 32>}]} {
    %c0 = arith.constant 0 : index
    %c0_0 = arith.constant 0 : index
    %0 = vector.load %arg1[%c0, %c0_0] : memref<8x32xf32, #tpu.memory_space<vmem>>, vector<8x32xf32>
    %1 = arith.truncf %0 : vector<8x32xf32> to vector<8x32xbf16>
    %c0_1 = arith.constant 0 : index
    %c0_2 = arith.constant 0 : index
    %2 = vector.load %arg2[%c0_1, %c0_2] : memref<32x64xbf16, #tpu.memory_space<vmem>>, vector<32x64xbf16>
    %cst = arith.constant dense<0.000000e+00> : vector<8x64xf32>
    %3 = tpu.matmul %1, %2, %cst {dimension_numbers = #tpu.dot_dimension_numbers<[1], [0], [0], [1], [0, 0, 1, 1], [], []>} : vector<8x32xbf16>, vector<32x64xbf16>, vector<8x64xf32> -> vector<8x64xf32>
    %c0_3 = arith.constant 0 : index
    %c0_4 = arith.constant 0 : index
    %4 = vector.load %arg3[%c0_3, %c0_4] : memref<1x64xf32, #tpu.memory_space<vmem>>, vector<1x64xf32>
    %5 = vector.broadcast %4 : vector<1x64xf32> to vector<8x64xf32>
    %6 = arith.addf %3, %5 : vector<8x64xf32>
    %7 = arith.mulf %6, %6 : vector<8x64xf32>
    %8 = arith.mulf %6, %7 : vector<8x64xf32>
    %cst_5 = arith.constant 4.471500e-02 : f32
    %9 = vector.broadcast %cst_5 : f32 to vector<8x64xf32>
    %10 = arith.mulf %9, %8 : vector<8x64xf32>
    %11 = arith.addf %6, %10 : vector<8x64xf32>
    %cst_6 = arith.constant 0.797884583 : f32
    %12 = vector.broadcast %cst_6 : f32 to vector<8x64xf32>
    %13 = arith.mulf %12, %11 : vector<8x64xf32>
    %14 = math.tanh %13 : vector<8x64xf32>
    %cst_7 = arith.constant 1.000000e+00 : f32
    %15 = vector.broadcast %cst_7 : f32 to vector<8x64xf32>
    %16 = arith.addf %15, %14 : vector<8x64xf32>
    %cst_8 = arith.constant 5.000000e-01 : f32
    %17 = vector.broadcast %cst_8 : f32 to vector<8x64xf32>
    %18 = arith.mulf %17, %16 : vector<8x64xf32>
    %19 = arith.mulf %6, %18 : vector<8x64xf32>
    %20 = arith.truncf %19 : vector<8x64xf32> to vector<8x64xbf16>
    %c0_9 = arith.constant 0 : index
    %c0_10 = arith.constant 0 : index
    %21 = vector.load %arg4[%c0_9, %c0_10] : memref<64x32xbf16, #tpu.memory_space<vmem>>, vector<64x32xbf16>
    %cst_11 = arith.constant dense<0.000000e+00> : vector<8x32xf32>
    %22 = tpu.matmul %20, %21, %cst_11 {dimension_numbers = #tpu.dot_dimension_numbers<[1], [0], [0], [1], [0, 0, 1, 1], [], []>} : vector<8x64xbf16>, vector<64x32xbf16>, vector<8x32xf32> -> vector<8x32xf32>
    %c0_12 = arith.constant 0 : index
    %c0_13 = arith.constant 0 : index
    %23 = vector.load %arg5[%c0_12, %c0_13] : memref<1x32xf32, #tpu.memory_space<vmem>>, vector<1x32xf32>
    %24 = vector.broadcast %23 : vector<1x32xf32> to vector<8x32xf32>
    %25 = arith.addf %22, %24 : vector<8x32xf32>
    %c0_14 = arith.constant 0 : index
    %c0_15 = arith.constant 0 : index
    %26 = vector.load %arg6[%c0_14, %c0_15] : memref<8x32xf32, #tpu.memory_space<vmem>>, vector<8x32xf32>
    tpu.vector_store %arg6[%c0_14, %c0_15], %25 {strides = array<i32>} : memref<8x32xf32, #tpu.memory_space<vmem>>, vector<8x32xf32>,
    return
  }
  func.func @transform_0(%arg0: i32) -> (i32, i32) {
    %c0_i32 = arith.constant 0 : i32
    %c0_i32_0 = arith.constant 0 : i32
    return %arg0, %c0_i32 : i32, i32
  }
  func.func @transform_1(%arg0: i32) -> (i32, i32) {
    %c0_i32 = arith.constant 0 : i32
    %c0_i32_0 = arith.constant 0 : i32
    %c0_i32_1 = arith.constant 0 : i32
    return %c0_i32, %c0_i32_0 : i32, i32
  }
  func.func @transform_2(%arg0: i32) -> (i32, i32) {
    %c0_i32 = arith.constant 0 : i32
    %c0_i32_0 = arith.constant 0 : i32
    %c0_i32_1 = arith.constant 0 : i32
    return %c0_i32, %c0_i32_0 : i32, i32
  }
  func.func @transform_3(%arg0: i32) -> (i32, i32) {
    %c0_i32 = arith.constant 0 : i32
    %c0_i32_0 = arith.constant 0 : i32
    %c0_i32_1 = arith.constant 0 : i32
    return %c0_i32, %c0_i32_0 : i32, i32
  }
  func.func @transform_4(%arg0: i32) -> (i32, i32) {
    %c0_i32 = arith.constant 0 : i32
    %c0_i32_0 = arith.constant 0 : i32
    %c0_i32_1 = arith.constant 0 : i32
    return %c0_i32, %c0_i32_0 : i32, i32
  }
  func.func @transform_5(%arg0: i32) -> (i32, i32) {
    %c0_i32 = arith.constant 0 : i32
    %c0_i32_0 = arith.constant 0 : i32
    return %arg0, %c0_i32 : i32, i32
  }
}

</mosaic_0001>

<bundles_post_ra>
// kernel: mlp_forward.1
= control target key start
LH: loop header
LB: loop body
LE: loop exit
PB: predicated region body
PF: predicated region fallthrough
CT: control target
= control target key end

     0   :  { %10 = vsyncpa [#allocation3], 0  ;;  %s689_s0 = inlined_call_operand.vmem [shape: f32[16,32], index: 0, kind: input, shape index: {}]   ;;  %s690_s1 = inlined_call_operand.vmem [shape: bf16[32,64], index: 1, kind: input, shape index: {}]   ;;  %s691_s2 = inlined_call_operand.vmem [shape: f32[1,64], index: 2, kind: input, shape index: {}]   ;;  %s692_s3 = inlined_call_operand.vmem [shape: bf16[64,32], index: 3, kind: input, shape index: {}]   ;;  %s693_s4 = inlined_call_operand.vmem [shape: f32[1,32], index: 4, kind: input, shape index: {}]   ;;  %s694_s5 = inlined_call_operand.hbm [shape: f32[16,32], index: 5, kind: output, shape index: {}]  }
   0x1   :  { %12 = vsyncpa [#allocation3 + $0x1], 0  ;;  %s578_s18 = smov 0   ;;  %s580_s19 = smov 0  }
   0x2   :  { %s582_s20 = smov 0   ;;  %s584_s21 = smov 0  }
   0x3 LB: > { %s599_s22 = sadd.s32 4294967295, %s546_s21   ;;  %s399_s23 = sadd.s32 4294967294, %s546_s21   ;;  %s546_s21 = sphi %s584_s21, %s700_s21   ;;  %s542_s20 = sphi %s582_s20, %s699_s20   ;;  %s538_s19 = sphi %s580_s19, %s698_s19   ;;  %s534_s18 = sphi %s578_s18, %s697_s18  }
   0x4   : > { %s603_s24 = sadd.s32 1, %s546_s21   ;;  %s135_s25 = sadd.s32 1, %s542_s20 }
   0x5   : > { %s132_s26 = ssub.s32 %s546_s21, %s603_s24  ;;  %p145_p0 = scmp.ne.s32.totalorder %s542_s20, %s538_s19 }
   0x6   : > { %p133_p1 = scmp.eq.s32.totalorder %s132_s26, 0  ;;  %p146_p2 = scmp.eq.s32.totalorder %s599_s22, 1 }
   0x7   : > { %p151_p3 = scmp.ne.s32.totalorder %s538_s19, %s534_s18  ;;  %p152_p4 = scmp.eq.s32.totalorder %s399_s23, 1 }
   0x8   : > { %s614_s27 = scalar_select %p133_p1, %s542_s20, %s135_s25  }
   0x9   : > { %p616_p5 = por %p146_p2, %p145_p0  ;;  %p620_p6 = por %p152_p4, %p151_p3 }
   0xa   : > { %p402_p7 = scmp.ge.s32.totalorder %s546_s21, 1  ;;  %p189_p8 = scmp.lt.s32.totalorder %s546_s21, 3 }
   0xc   : > { %p190_p9 = pnand %p402_p7, %p189_p8 }
   0xd   : > { %p216_p10 = scmp.lt.s32.totalorder (!%p190_p9), %s599_s22, 1  ;;  %s213_s8 = sand.u32 (!%p190_p9), 1, %s538_s19  }
   0xe   : > { %193 = sbr.rel (%p190_p9) target bundleno = 314 (0x13a), region = 40  ;;  %s504_s7 = scalar_lea.hbm (!%p190_p9), %s694_s5, 16 }
  0x13   : > { %v436_v0 = vld [vmem:[%s690_s1 + $0x8] sm:$0xff]  ;;  %v435_v1 = vld [vmem:[%s690_s1] sm:$0xff]  ;;  %s217_s9 = scalar_select %p216_p10, %s599_s22, 1  ;;  %vm243_vm0 = vcmask 261120   ;;  %v440_v4 = vld [vmem:[%s692_s3 + $0x18] sm:$0xff]  ;;  %vm306_vm1 = vcmask 523264  }
  0x14   : > { %253 = vmatpush.bf16.msra.mxu0 %v436_v0  ;;  %314 = vmatpush.bf16.msra.mxu1 %v440_v4  ;;  %v439_v5 = vld [vmem:[%s692_s3 + $0x10] sm:$0xff]  ;;  %v438_v6 = vld [vmem:[%s692_s3 + $0x8] sm:$0xff]  ;;  %v437_v7 = vld [vmem:[%s692_s3] sm:$0xff] }
  0x15   : > { %s404_s10 = sshll.u32 %s217_s9, 3  ;;  %v480_v8 = vld [vmem:[%s691_s2] ss:$0 sm:$0xff]  ;;  %s432_s9 = sshll.u32 %s599_s22, 3 }
  0x16   : > { %s219_s13 = scalar_lea.vmem %s689_s0, %s404_s10  ;;  %s403_s10 = sshll.u32 %s213_s8, 3  ;;  %v481_v22 = vld [vmem:[%s693_s4] ss:$0 sm:$0xff] }
  0x17   : > { %v221_v2 = vld [vmem:[%s219_s13] sm:$0xff]  ;;  %s335_s13 = scalar_lea.hbm %s694_s5, %s432_s9  ;;  %s215_s16 = scalar_lea.vmem [#allocation2], %s403_s10 }
  0x18   : > { %254 = vmatpush.bf16.msra.mxu0 %v435_v1  ;;  %v222_v3 = vpack.c.bf16 %v221_v2, %v221_v2  ;;  %315 = vmatpush.bf16.msra.mxu1 %v439_v5  ;;  %s337_s17 = sshll.u32 %s215_s16, 4  ;;  %s339_s23 = sshll.u32 %s335_s13, 4  ;;  %s338_s17 = int_to_ptr.vmem [resolvable:$true] %s337_s17  ;;  %s340_s23 = int_to_ptr.hbm [resolvable:$true] %s339_s23 }
  0x19   : > { %s325_s22 = scalar_lea.sflag [#allocation3], %s213_s8  ;;  %s498_s25 = sshra.s32 %s340_s23, 4  ;;  %s499_s25 = int_to_ptr.hbm [resolvable:$true] %s498_s25 }
  0x1a   : > { %s500_s26 = scalar_lea.hbm %s499_s25, 8  ;;  %p505_p0 = scmp.lt.s32.totalorder %s499_s25, %s694_s5 }
  0x1b   : > { %413 = vmatmul.msk.bf16.vlgmr.msra.gmra.mxu0 %vm243_vm0, %v222_v3  ;;  %p501_p11 = scmp.ne.s32.totalorder %s499_s25, %s500_s26  ;;  %p506_p1 = scmp.lt.s32.totalorder %s504_s7, %s500_s26 }
  0x1c   : > { %316 = vmatpush.bf16.msra.mxu1 %v438_v6 }
  0x1d   : > { %p502_p12 = pnand %p501_p11, %p616_p5  ;;  %p507_p2 = por %p506_p1, %p505_p0 }
  0x1f   : > { %p503_p13 = pneg %p502_p12 }
  0x20   : > { %317 = vmatpush.bf16.msra.mxu1 %v437_v7 }
  0x21   : > { %p508_p3 = pnand %p507_p2, %p503_p13 }
  0x98   : > { %v256_v9 = vpop.f32.mrf.mxu0 }
  0x99   : > { %v257_v10 = vadd.f32 %v480_v8, %v256_v9 }
  0x9b   : > { %v260_v11 = vmul.f32 %v257_v10, %v257_v10 }
  0x9d   : > { %v261_v12 = vmul.f32 %v260_v11, %v257_v10 }
  0x9f   : > { %v262_v13 = vmul.f32 0.044715, %v261_v12 }
  0xa0   : > { %v258_v14 = vpop.f32.mrf.mxu0 }
  0xa1   : > { %v263_v15 = vadd.f32 %v262_v13, %v257_v10 }
  0xa3   : > { %v264_v16 = vmul.f32 0.7978846, %v263_v15 }
  0xa5   : > { %482 = vtanh.f32 %v264_v16 }
  0xab   : > { %v483_v17 = vpop.eup %482 }
  0xac   : > { %v266_v18 = vadd.f32 1.0, %v483_v17 }
  0xae   : > { %v267_v19 = vmul.f32 0.5, %v266_v18 }
  0xb0   : > { %v268_v20 = vmul.f32 %v267_v19, %v257_v10 }
  0xb2   : > { %v269_v21 = vpack.c.bf16 %v268_v20, %v268_v20 }
  0xb4   : > { %430 = vmatmul.msk.bf16.vlgmr.msra.gmra.mxu1 %vm306_vm1, %v269_v21 }
 0x131   : > { %v319_v23 = vpop.f32.mrf.mxu1 }
 0x132   : > { %v320_v24 = vadd.f32 %v481_v22, %v319_v23 }
 0x134   : > { %323 = vst.msk [vmem:[%s215_s16] sm:$0xff] %vm243_vm0, %v320_v24 }
 0x135   : > { %511 = shalt.err (!%p508_p3)
}
 0x136   : > { %441 = dma.vmem_to_hbm [thread:$0]  (%p616_p5), %s338_s17, 128, %s340_s23, %s325_s22  }
 0x139   : > { %v321_v25 = vpop.f32.mrf.mxu1 }
 0x13a PF: > { %p447_p4 = scmp.ge.s32.totalorder %s546_s21, 2  ;;  %s351_s8 = sand.u32 1, %s534_s18  }
 0x13b   : > { %s352_s11 = scalar_lea.sflag [#allocation3], %s351_s8 }
 0x13c   : > { %p444_p7 = pnand %p447_p4, %p620_p6 }
 0x13e   : > { %p445_p8 = pneg %p444_p7 }
 0x140   : > { %529 = dma.done.wait (%p445_p8), %s352_s11, 128  }
 0x141   : > { %531 = vsyncadd (%p445_p8), %s352_s11, 4294967168  ;;  %p15_p9 = scmp.ge.s32.totalorder %s603_s24, 4   ;;  %s697_s18 = smov %s538_s19 }
 0x142   : > { %s698_s19 = smov %s542_s20  ;;  %s699_s20 = smov %s614_s27 }
 0x143   : > { %s700_s21 = smov %s603_s24  ;;  %17 = sbr.rel (!%p15_p9) target bundleno = 3 (0x3), region = 75 }
 0x148   :  { %358 = vsyncpa [#allocation3], 1 }
 0x149   :  { %360 = vsyncpa [#allocation3 + $0x1], 1 }

</bundles_post_ra>
